<compile_context>
chip_gen: v6e
topology: v6e:2x2x1
jax: 0.10.0
libtpu: 0.0.40
codegen_flags: <defaults>
</compile_context>

<pallas_src>
import jax
import jax.numpy as jnp
import numpy as np
from jax.experimental import pallas as pl
from jax.experimental.pallas import tpu as pltpu

_LANES = 128
_SUBLANES = 8
# 1024 rows x 128 lanes x 4 B = 512 KiB per tile.  In+out double-buffered is
# ~2 MiB -> safely under v5e's 16 MiB default scoped VMEM and v7x's 64 MiB
# physical VMEM, while large enough (>= few hundred KiB) to reach ~85% of the
# HBM roofline on v6e for copy-style kernels.
_MAX_BLOCK_ROWS = 1024


def _copy_kernel(x_ref, o_ref):
    # Full-tile passthrough: one unmasked lane-dense load + store per grid step.
    o_ref[...] = x_ref[...]


def _identity_copy_2d(x2d):
    rows, cols = x2d.shape
    block_rows = rows if rows <= _MAX_BLOCK_ROWS else _MAX_BLOCK_ROWS
    nbytes = rows * cols * x2d.dtype.itemsize
    return pl.pallas_call(
        _copy_kernel,
        out_shape=jax.ShapeDtypeStruct((rows, cols), x2d.dtype),
        grid=(pl.cdiv(rows, block_rows),),
        in_specs=[pl.BlockSpec((block_rows, cols), lambda i: (i, 0))],
        out_specs=pl.BlockSpec((block_rows, cols), lambda i: (i, 0)),
        # Output aliases the (intermediate) input slab -> in-place write-back.
        input_output_aliases={0: 0},
        # Pure-bandwidth op: zero flops, read + write of the slab.
        cost_estimate=pl.CostEstimate(
            flops=0, transcendentals=0, bytes_accessed=2 * nbytes
        ),
        compiler_params=pltpu.CompilerParams(
            dimension_semantics=("parallel",),
        ),
    )(x2d)


@jax.jit
def base_ssl_forward(x):
    """Pallas implementation of BaseSSL.forward semantics (identity / no-op).

    x: array in NCHW layout, shape [B, C, H, W] (any float dtype).
    Returns an array identical to x — the closest well-defined tensor
    semantics for the base class's empty forward.
    """
    orig_shape = x.shape
    total = int(np.prod(orig_shape))

    # Flatten fully and pad to a multiple of 8*128 so the 2-D slab is
    # (rows, 128) with rows % 8 == 0 -> exactly (8,128)-tile aligned and
    # every vector store hits all 128 lanes unmasked.
    chunk = _SUBLANES * _LANES
    padded = ((total + chunk - 1) // chunk) * chunk
    flat = x.reshape(total)
    if padded != total:
        flat = jnp.pad(flat, (0, padded - total))
    x2d = flat.reshape(padded // _LANES, _LANES)   # (2,4,16,16) -> (16, 128)

    out2d = _identity_copy_2d(x2d)
    return out2d.reshape(padded)[:total].reshape(orig_shape)


if __name__ == "__main__":
    key = jax.random.PRNGKey(0)
    # Small NCHW input consistent with an SSL image model (cifar-like, shrunk).
    x = jax.random.normal(key, (2, 4, 16, 16), dtype=jnp.float32)
    x_host = np.asarray(x)  # host-side reference copy (safe w.r.t. aliasing)

    y = base_ssl_forward(x)
    y = jax.block_until_ready(y)

    # Sanity check: identity semantics.
    assert y.shape == x.shape
    assert np.allclose(np.asarray(y), x_host)

    print("KERNEL_OK")
</pallas_src>

<mosaic_0001>
module attributes {stable_mosaic.version = 11 : i64} {
  func.func @_copy_kernel(%arg0: i32, %arg1: memref<16x128xf32, #tpu.memory_space<vmem>>, %arg2: memref<16x128xf32, #tpu.memory_space<vmem>>) attributes {dimension_semantics = [#tpu.dimension_semantics<parallel>], iteration_bounds = array<i64: 1>, scalar_prefetch = 0 : i64, scratch_operands = 0 : i64, tpu.core_type = #tpu.core_type<tc>, window_params = [{transform_indices = @transform_0, window_bounds = array<i64: 16, 128>}, {transform_indices = @transform_1, window_bounds = array<i64: 16, 128>}]} {
    %c0 = arith.constant 0 : index
    %c0_0 = arith.constant 0 : index
    %0 = vector.load %arg1[%c0, %c0_0] : memref<16x128xf32, #tpu.memory_space<vmem>>, vector<16x128xf32>
    %c0_1 = arith.constant 0 : index
    %c0_2 = arith.constant 0 : index
    %1 = vector.load %arg2[%c0_1, %c0_2] : memref<16x128xf32, #tpu.memory_space<vmem>>, vector<16x128xf32>
    tpu.vector_store %arg2[%c0_1, %c0_2], %0 {strides = array<i32>} : memref<16x128xf32, #tpu.memory_space<vmem>>, vector<16x128xf32>,
    return
  }
  func.func @transform_0(%arg0: i32) -> (i32, i32) {
    %c0_i32 = arith.constant 0 : i32
    %c0_i32_0 = arith.constant 0 : i32
    return %arg0, %c0_i32 : i32, i32
  }
  func.func @transform_1(%arg0: i32) -> (i32, i32) {
    %c0_i32 = arith.constant 0 : i32
    %c0_i32_0 = arith.constant 0 : i32
    return %arg0, %c0_i32 : i32, i32
  }
}

</mosaic_0001>

<bundles_post_ra>
// kernel: base_ssl_forward.1
= control target key start
LH: loop header
LB: loop body
LE: loop exit
PB: predicated region body
PF: predicated region fallthrough
CT: control target
= control target key end

     0   :  { %s38_s0 = inlined_call_operand.vmem [shape: f32[16,128], index: 0, kind: input, shape index: {}, may-alias: {0,1}]   ;;  %s39_s1 = inlined_call_operand.vmem [shape: f32[16,128], index: 1, kind: output, shape index: {}, may-alias: {0,1}]  }
   0x1   :  { %v8_v0 = vld [vmem:[%s38_s0] sm:$0xff]  ;;  %v9_v1 = vld [vmem:[%s38_s0 + $0x8] sm:$0xff] }
   0x2   :  { %10 = vst [vmem:[%s39_s1] sm:$0xff] %v8_v0  ;;  %11 = vst [vmem:[%s39_s1 + $0x8] sm:$0xff] %v9_v1 }

</bundles_post_ra>
